<compile_context>
chip_gen: v5e
topology: v5e:2x2
jax: 0.10.0
libtpu: 0.0.40
codegen_flags: <defaults>
</compile_context>

<pallas_src>
import jax
import jax.numpy as jnp
from jax import lax
from jax.experimental import pallas as pl
from jax.experimental.pallas import tpu as pltpu

EPS = 1e-5
CHUNK = 256  # lane-chunk width (multiple of 128)


def _bn_kernel(x_ref, w_ref, b_ref, o_ref):
    # x_ref: (N, C, L) input (L = H*W), w_ref/b_ref: (C, 1) f32, o_ref: (N, C, L)
    N, C, L = x_ref.shape
    n_full = L // CHUNK
    rem = L - n_full * CHUNK
    inv_count = 1.0 / float(N * L)

    # ---- Pass 1: chunked single-pass sum / sum-of-squares (f32 accumulation,
    # pure VALU adds). The rem-wide tail is accumulated at its own width; every
    # cross-lane (XLU) reduction is deferred to a single point after the loop.
    acc_s = jnp.zeros((C, CHUNK), jnp.float32)
    acc_ss = jnp.zeros((C, CHUNK), jnp.float32)
    t_s = jnp.zeros((C, rem), jnp.float32) if rem else None
    t_ss = jnp.zeros((C, rem), jnp.float32) if rem else None
    for n in range(N):
        for i in range(n_full):
            xc = x_ref[n, :, pl.ds(i * CHUNK, CHUNK)].astype(jnp.float32)
            acc_s = acc_s + xc
            acc_ss = acc_ss + xc * xc
        if rem:
            xt = x_ref[n, :, pl.ds(n_full * CHUNK, rem)].astype(jnp.float32)
            t_s = t_s + xt
            t_ss = t_ss + xt * xt

    s = jnp.sum(acc_s, axis=1, keepdims=True)    # (C, 1)
    ss = jnp.sum(acc_ss, axis=1, keepdims=True)  # (C, 1)
    if rem:
        s = s + jnp.sum(t_s, axis=1, keepdims=True)
        ss = ss + jnp.sum(t_ss, axis=1, keepdims=True)

    mean = s * inv_count
    # Biased variance (training-mode). Clamp at 0: E[x^2] - E[x]^2 can go
    # slightly negative in f32 under cancellation, which would NaN the rsqrt.
    var = jnp.maximum(ss * inv_count - mean * mean, 0.0)
    inv_std = lax.rsqrt(var + EPS)

    # Fold normalization + affine: o = x * scale + shift
    scale = w_ref[...] * inv_std        # (C, 1)
    shift = b_ref[...] - mean * scale   # (C, 1)

    # ---- Pass 2: apply, 2 VPU ops/element, re-reading x from VMEM (cheap vld).
    # All full-width stores are at 128-aligned starts -> unmasked vst; only the
    # final 16-lane tail uses a (single, aligned) masked store.
    for n in range(N):
        for i in range(n_full):
            xc = x_ref[n, :, pl.ds(i * CHUNK, CHUNK)].astype(jnp.float32)
            o_ref[n, :, pl.ds(i * CHUNK, CHUNK)] = (xc * scale + shift).astype(o_ref.dtype)
        if rem:
            xt = x_ref[n, :, pl.ds(n_full * CHUNK, rem)].astype(jnp.float32)
            o_ref[n, :, pl.ds(n_full * CHUNK, rem)] = (xt * scale + shift).astype(o_ref.dtype)


def batchnorm2d_pallas(x_nchw, weight, bias):
    """BatchNorm2d forward with batch statistics (PyTorch training-mode semantics)."""
    N, C, H, W = x_nchw.shape
    L = H * W

    # Pure reshape (no transpose, no copy): NCHW -> (N, C, H*W).
    x3d = x_nchw.reshape(N, C, L)
    w2d = weight.reshape(C, 1).astype(jnp.float32)
    b2d = bias.reshape(C, 1).astype(jnp.float32)

    itemsize = jnp.dtype(x_nchw.dtype).itemsize
    cost = pl.CostEstimate(
        flops=5 * N * C * L,                      # ~3 ops/elem stats + 2 ops/elem apply
        transcendentals=C,                        # one rsqrt per channel
        bytes_accessed=2 * N * C * L * itemsize,  # read x once, write o once
    )

    out3d = pl.pallas_call(
        _bn_kernel,
        out_shape=jax.ShapeDtypeStruct((N, C, L), x_nchw.dtype),
        grid=(1,),
        in_specs=[
            pl.BlockSpec((N, C, L), lambda i: (0, 0, 0)),
            pl.BlockSpec((C, 1), lambda i: (0, 0)),
            pl.BlockSpec((C, 1), lambda i: (0, 0)),
        ],
        out_specs=pl.BlockSpec((N, C, L), lambda i: (0, 0, 0)),
        compiler_params=pltpu.CompilerParams(
            dimension_semantics=("arbitrary",)),
        cost_estimate=cost,
    )(x3d, w2d, b2d)

    # Pure reshape back: (N, C, H*W) -> (N, C, H, W).
    return out3d.reshape(N, C, H, W)


def _reference_bn(x_nchw, weight, bias):
    x = x_nchw.astype(jnp.float32)
    mean = jnp.mean(x, axis=(0, 2, 3), keepdims=True)
    var = jnp.mean((x - mean) ** 2, axis=(0, 2, 3), keepdims=True)
    w = weight.reshape(1, -1, 1, 1)
    b = bias.reshape(1, -1, 1, 1)
    return (x - mean) / jnp.sqrt(var + EPS) * w + b


if __name__ == "__main__":
    key = jax.random.PRNGKey(0)
    kx, kw, kb = jax.random.split(key, 3)

    # Shape implied by the module's forward: [1, 48, 28, 28]
    N, C, H, W = 1, 48, 28, 28
    x = jax.random.normal(kx, (N, C, H, W), dtype=jnp.float32)

    # PyTorch default init is weight=1, bias=0; perturb so the affine path is
    # actually exercised.
    weight = jax.random.normal(kw, (C,), dtype=jnp.float32) * 0.1 + 1.0
    bias = jax.random.normal(kb, (C,), dtype=jnp.float32) * 0.1

    out = batchnorm2d_pallas(x, weight, bias)
    out = jax.block_until_ready(out)

    ref = _reference_bn(x, weight, bias)
    assert out.shape == (N, C, H, W)
    assert jnp.max(jnp.abs(out - ref)) < 1e-4

    print("KERNEL_OK")
</pallas_src>

<mosaic_0001>
module attributes {stable_mosaic.version = 11 : i64} {
  func.func @_bn_kernel(%arg0: i32, %arg1: memref<1x48x784xf32, #tpu.memory_space<vmem>>, %arg2: memref<48x1xf32, #tpu.memory_space<vmem>>, %arg3: memref<48x1xf32, #tpu.memory_space<vmem>>, %arg4: memref<1x48x784xf32, #tpu.memory_space<vmem>>) attributes {dimension_semantics = [#tpu.dimension_semantics<arbitrary>], iteration_bounds = array<i64: 1>, scalar_prefetch = 0 : i64, scratch_operands = 0 : i64, tpu.core_type = #tpu.core_type<tc>, window_params = [{pipeline_mode = #tpu.pipeline_mode<synchronous>, transform_indices = @transform_0, window_bounds = array<i64: 1, 48, 784>}, {pipeline_mode = #tpu.pipeline_mode<synchronous>, transform_indices = @transform_1, window_bounds = array<i64: 48, 1>}, {pipeline_mode = #tpu.pipeline_mode<synchronous>, transform_indices = @transform_2, window_bounds = array<i64: 48, 1>}, {pipeline_mode = #tpu.pipeline_mode<synchronous>, transform_indices = @transform_3, window_bounds = array<i64: 1, 48, 784>}]} {
    %cst = arith.constant 0.000000e+00 : f32
    %0 = vector.broadcast %cst : f32 to vector<48x256xf32>
    %cst_0 = arith.constant 0.000000e+00 : f32
    %1 = vector.broadcast %cst_0 : f32 to vector<48x256xf32>
    %cst_1 = arith.constant 0.000000e+00 : f32
    %2 = vector.broadcast %cst_1 : f32 to vector<48x16xf32>
    %cst_2 = arith.constant 0.000000e+00 : f32
    %3 = vector.broadcast %cst_2 : f32 to vector<48x16xf32>
    %c0 = arith.constant 0 : index
    %c0_3 = arith.constant 0 : index
    %c0_4 = arith.constant 0 : index
    %4 = vector.load %arg1[%c0, %c0_3, %c0_4] : memref<1x48x784xf32, #tpu.memory_space<vmem>>, vector<1x48x256xf32>
    %5 = vector.shape_cast %4 : vector<1x48x256xf32> to vector<48x256xf32>
    %6 = arith.addf %0, %5 : vector<48x256xf32>
    %7 = arith.mulf %5, %5 : vector<48x256xf32>
    %8 = arith.addf %1, %7 : vector<48x256xf32>
    %c0_5 = arith.constant 0 : index
    %c0_6 = arith.constant 0 : index
    %c256 = arith.constant 256 : index
    %9 = vector.load %arg1[%c0_5, %c0_6, %c256] : memref<1x48x784xf32, #tpu.memory_space<vmem>>, vector<1x48x256xf32>
    %10 = vector.shape_cast %9 : vector<1x48x256xf32> to vector<48x256xf32>
    %11 = arith.addf %6, %10 : vector<48x256xf32>
    %12 = arith.mulf %10, %10 : vector<48x256xf32>
    %13 = arith.addf %8, %12 : vector<48x256xf32>
    %c0_7 = arith.constant 0 : index
    %c0_8 = arith.constant 0 : index
    %c512 = arith.constant 512 : index
    %14 = vector.load %arg1[%c0_7, %c0_8, %c512] : memref<1x48x784xf32, #tpu.memory_space<vmem>>, vector<1x48x256xf32>
    %15 = vector.shape_cast %14 : vector<1x48x256xf32> to vector<48x256xf32>
    %16 = arith.addf %11, %15 : vector<48x256xf32>
    %17 = arith.mulf %15, %15 : vector<48x256xf32>
    %18 = arith.addf %13, %17 : vector<48x256xf32>
    %c0_9 = arith.constant 0 : index
    %c0_10 = arith.constant 0 : index
    %c768 = arith.constant 768 : index
    %19 = vector.load %arg1[%c0_9, %c0_10, %c768] : memref<1x48x784xf32, #tpu.memory_space<vmem>>, vector<1x48x16xf32>
    %20 = vector.shape_cast %19 : vector<1x48x16xf32> to vector<48x16xf32>
    %21 = arith.addf %2, %20 : vector<48x16xf32>
    %22 = arith.mulf %20, %20 : vector<48x16xf32>
    %23 = arith.addf %3, %22 : vector<48x16xf32>
    %cst_11 = arith.constant dense<0.000000e+00> : vector<48xf32>
    %24 = vector.multi_reduction <add>, %16, %cst_11 [1] : vector<48x256xf32> to vector<48xf32>
    %25 = vector.shape_cast %24 : vector<48xf32> to vector<48x1xf32>
    %cst_12 = arith.constant dense<0.000000e+00> : vector<48xf32>
    %26 = vector.multi_reduction <add>, %18, %cst_12 [1] : vector<48x256xf32> to vector<48xf32>
    %27 = vector.shape_cast %26 : vector<48xf32> to vector<48x1xf32>
    %cst_13 = arith.constant dense<0.000000e+00> : vector<48xf32>
    %28 = vector.multi_reduction <add>, %21, %cst_13 [1] : vector<48x16xf32> to vector<48xf32>
    %29 = vector.shape_cast %28 : vector<48xf32> to vector<48x1xf32>
    %30 = arith.addf %25, %29 : vector<48x1xf32>
    %cst_14 = arith.constant dense<0.000000e+00> : vector<48xf32>
    %31 = vector.multi_reduction <add>, %23, %cst_14 [1] : vector<48x16xf32> to vector<48xf32>
    %32 = vector.shape_cast %31 : vector<48xf32> to vector<48x1xf32>
    %33 = arith.addf %27, %32 : vector<48x1xf32>
    %cst_15 = arith.constant 0.00127551018 : f32
    %34 = vector.broadcast %cst_15 : f32 to vector<48x1xf32>
    %35 = arith.mulf %30, %34 : vector<48x1xf32>
    %cst_16 = arith.constant 0.00127551018 : f32
    %36 = vector.broadcast %cst_16 : f32 to vector<48x1xf32>
    %37 = arith.mulf %33, %36 : vector<48x1xf32>
    %38 = arith.mulf %35, %35 : vector<48x1xf32>
    %39 = arith.subf %37, %38 : vector<48x1xf32>
    %cst_17 = arith.constant 0.000000e+00 : f32
    %40 = vector.broadcast %cst_17 : f32 to vector<48x1xf32>
    %41 = arith.maximumf %39, %40 : vector<48x1xf32>
    %cst_18 = arith.constant 9.99999974E-6 : f32
    %42 = vector.broadcast %cst_18 : f32 to vector<48x1xf32>
    %43 = arith.addf %41, %42 : vector<48x1xf32>
    %44 = math.rsqrt %43 : vector<48x1xf32>
    %c0_19 = arith.constant 0 : index
    %c0_20 = arith.constant 0 : index
    %45 = vector.load %arg2[%c0_19, %c0_20] : memref<48x1xf32, #tpu.memory_space<vmem>>, vector<48x1xf32>
    %46 = arith.mulf %45, %44 : vector<48x1xf32>
    %c0_21 = arith.constant 0 : index
    %c0_22 = arith.constant 0 : index
    %47 = vector.load %arg3[%c0_21, %c0_22] : memref<48x1xf32, #tpu.memory_space<vmem>>, vector<48x1xf32>
    %48 = arith.mulf %35, %46 : vector<48x1xf32>
    %49 = arith.subf %47, %48 : vector<48x1xf32>
    %c0_23 = arith.constant 0 : index
    %c0_24 = arith.constant 0 : index
    %c0_25 = arith.constant 0 : index
    %50 = vector.load %arg1[%c0_23, %c0_24, %c0_25] : memref<1x48x784xf32, #tpu.memory_space<vmem>>, vector<1x48x256xf32>
    %51 = vector.shape_cast %50 : vector<1x48x256xf32> to vector<48x256xf32>
    %52 = vector.broadcast %46 : vector<48x1xf32> to vector<48x256xf32>
    %53 = arith.mulf %51, %52 : vector<48x256xf32>
    %54 = vector.broadcast %49 : vector<48x1xf32> to vector<48x256xf32>
    %55 = arith.addf %53, %54 : vector<48x256xf32>
    %c0_26 = arith.constant 0 : index
    %c0_27 = arith.constant 0 : index
    %c0_28 = arith.constant 0 : index
    %56 = vector.load %arg4[%c0_26, %c0_27, %c0_28] : memref<1x48x784xf32, #tpu.memory_space<vmem>>, vector<1x48x256xf32>
    %57 = vector.shape_cast %56 : vector<1x48x256xf32> to vector<48x256xf32>
    %58 = vector.shape_cast %55 : vector<48x256xf32> to vector<1x48x256xf32>
    tpu.vector_store %arg4[%c0_26, %c0_27, %c0_28], %58 {strides = array<i32>} : memref<1x48x784xf32, #tpu.memory_space<vmem>>, vector<1x48x256xf32>,
    %c0_29 = arith.constant 0 : index
    %c0_30 = arith.constant 0 : index
    %c256_31 = arith.constant 256 : index
    %59 = vector.load %arg1[%c0_29, %c0_30, %c256_31] : memref<1x48x784xf32, #tpu.memory_space<vmem>>, vector<1x48x256xf32>
    %60 = vector.shape_cast %59 : vector<1x48x256xf32> to vector<48x256xf32>
    %61 = vector.broadcast %46 : vector<48x1xf32> to vector<48x256xf32>
    %62 = arith.mulf %60, %61 : vector<48x256xf32>
    %63 = vector.broadcast %49 : vector<48x1xf32> to vector<48x256xf32>
    %64 = arith.addf %62, %63 : vector<48x256xf32>
    %c0_32 = arith.constant 0 : index
    %c0_33 = arith.constant 0 : index
    %c256_34 = arith.constant 256 : index
    %65 = vector.load %arg4[%c0_32, %c0_33, %c256_34] : memref<1x48x784xf32, #tpu.memory_space<vmem>>, vector<1x48x256xf32>
    %66 = vector.shape_cast %65 : vector<1x48x256xf32> to vector<48x256xf32>
    %67 = vector.shape_cast %64 : vector<48x256xf32> to vector<1x48x256xf32>
    tpu.vector_store %arg4[%c0_32, %c0_33, %c256_34], %67 {strides = array<i32>} : memref<1x48x784xf32, #tpu.memory_space<vmem>>, vector<1x48x256xf32>,
    %c0_35 = arith.constant 0 : index
    %c0_36 = arith.constant 0 : index
    %c512_37 = arith.constant 512 : index
    %68 = vector.load %arg1[%c0_35, %c0_36, %c512_37] : memref<1x48x784xf32, #tpu.memory_space<vmem>>, vector<1x48x256xf32>
    %69 = vector.shape_cast %68 : vector<1x48x256xf32> to vector<48x256xf32>
    %70 = vector.broadcast %46 : vector<48x1xf32> to vector<48x256xf32>
    %71 = arith.mulf %69, %70 : vector<48x256xf32>
    %72 = vector.broadcast %49 : vector<48x1xf32> to vector<48x256xf32>
    %73 = arith.addf %71, %72 : vector<48x256xf32>
    %c0_38 = arith.constant 0 : index
    %c0_39 = arith.constant 0 : index
    %c512_40 = arith.constant 512 : index
    %74 = vector.load %arg4[%c0_38, %c0_39, %c512_40] : memref<1x48x784xf32, #tpu.memory_space<vmem>>, vector<1x48x256xf32>
    %75 = vector.shape_cast %74 : vector<1x48x256xf32> to vector<48x256xf32>
    %76 = vector.shape_cast %73 : vector<48x256xf32> to vector<1x48x256xf32>
    tpu.vector_store %arg4[%c0_38, %c0_39, %c512_40], %76 {strides = array<i32>} : memref<1x48x784xf32, #tpu.memory_space<vmem>>, vector<1x48x256xf32>,
    %c0_41 = arith.constant 0 : index
    %c0_42 = arith.constant 0 : index
    %c768_43 = arith.constant 768 : index
    %77 = vector.load %arg1[%c0_41, %c0_42, %c768_43] : memref<1x48x784xf32, #tpu.memory_space<vmem>>, vector<1x48x16xf32>
    %78 = vector.shape_cast %77 : vector<1x48x16xf32> to vector<48x16xf32>
    %79 = vector.broadcast %46 : vector<48x1xf32> to vector<48x16xf32>
    %80 = arith.mulf %78, %79 : vector<48x16xf32>
    %81 = vector.broadcast %49 : vector<48x1xf32> to vector<48x16xf32>
    %82 = arith.addf %80, %81 : vector<48x16xf32>
    %c0_44 = arith.constant 0 : index
    %c0_45 = arith.constant 0 : index
    %c768_46 = arith.constant 768 : index
    %83 = vector.load %arg4[%c0_44, %c0_45, %c768_46] : memref<1x48x784xf32, #tpu.memory_space<vmem>>, vector<1x48x16xf32>
    %84 = vector.shape_cast %83 : vector<1x48x16xf32> to vector<48x16xf32>
    %85 = vector.shape_cast %82 : vector<48x16xf32> to vector<1x48x16xf32>
    tpu.vector_store %arg4[%c0_44, %c0_45, %c768_46], %85 {strides = array<i32>} : memref<1x48x784xf32, #tpu.memory_space<vmem>>, vector<1x48x16xf32>,
    return
  }
  func.func @transform_0(%arg0: i32) -> (i32, i32, i32) {
    %c0_i32 = arith.constant 0 : i32
    %c0_i32_0 = arith.constant 0 : i32
    %c0_i32_1 = arith.constant 0 : i32
    %c0_i32_2 = arith.constant 0 : i32
    return %c0_i32, %c0_i32_0, %c0_i32_1 : i32, i32, i32
  }
  func.func @transform_1(%arg0: i32) -> (i32, i32) {
    %c0_i32 = arith.constant 0 : i32
    %c0_i32_0 = arith.constant 0 : i32
    %c0_i32_1 = arith.constant 0 : i32
    return %c0_i32, %c0_i32_0 : i32, i32
  }
  func.func @transform_2(%arg0: i32) -> (i32, i32) {
    %c0_i32 = arith.constant 0 : i32
    %c0_i32_0 = arith.constant 0 : i32
    %c0_i32_1 = arith.constant 0 : i32
    return %c0_i32, %c0_i32_0 : i32, i32
  }
  func.func @transform_3(%arg0: i32) -> (i32, i32, i32) {
    %c0_i32 = arith.constant 0 : i32
    %c0_i32_0 = arith.constant 0 : i32
    %c0_i32_1 = arith.constant 0 : i32
    %c0_i32_2 = arith.constant 0 : i32
    return %c0_i32, %c0_i32_0, %c0_i32_1 : i32, i32, i32
  }
}

</mosaic_0001>

<bundles_post_ra>
// kernel: tpu_custom_call.1
= control target key start
LH: loop header
LB: loop body
LE: loop exit
PB: predicated region body
PF: predicated region fallthrough
CT: control target
= control target key end

     0   :  { %8 = vsyncpa [#allocation3], 0  ;;  %s1144_s0 = inlined_call_operand.hbm [shape: f32[1,48,784], index: 0, kind: input, shape index: {}]   ;;  %s1145_s1 = inlined_call_operand.vmem [shape: f32[48,1], index: 1, kind: input, shape index: {}]   ;;  %s1146_s2 = inlined_call_operand.vmem [shape: f32[48,1], index: 2, kind: input, shape index: {}]   ;;  %s1147_s3 = inlined_call_operand.hbm [shape: f32[1,48,784], index: 3, kind: output, shape index: {}]  }
   0x1   :  { %9 = vsyncpa [#allocation4], 0  ;;  %s14_s14 = sshll.u32 %s1144_s0, 4  ;;  %s717_s15 = smov [#allocation2]   ;;  %s15_s14 = int_to_ptr.hbm [resolvable:$true] %s14_s14 }
   0x2   :  { %s16_s16 = sshll.u32 %s717_s15, 4  ;;  %s718_s17 = smov 896   ;;  %s17_s16 = int_to_ptr.vmem [resolvable:$true] %s16_s16 }
   0x3   :  { %s719_s18 = smov 56  }
   0x4   :  { %22 = dma.hbm_to_vmem [thread:$0]  %s15_s14, 5376, %s17_s16, [#allocation3], %s718_s17, %s718_s17, %s719_s18  }
   0x5   :  { %713 = dma.done.wait [#allocation3], 5376  }
   0x6   :  { %714 = vsyncadd [#allocation3], 4294961920  ;;  %v748_v0 = vld [vmem:[#allocation2 + $0xe0] sm:$0xff]  ;;  %v750_v1 = vld [vmem:[#allocation2 + $0xe8] sm:$0xff]  ;;  %vm235_vm0 = vcmask 130048   ;;  %s632_s0 = sshll.u32 %s1147_s3, 4  ;;  %s633_s0 = int_to_ptr.hbm [resolvable:$true] %s632_s0 }
   0x7   :  { %v752_v2 = vld [vmem:[#allocation2 + $0xf0] sm:$0xff]  ;;  %v754_v3 = vld [vmem:[#allocation2 + $0xf8] sm:$0xff]  ;;  %v758_v5 = vld [vmem:[#allocation2 + $0x100] sm:$0xff]  ;;  %v787_v18 = vmul.f32 %v748_v0, %v748_v0 }
   0x8   :  { %1159 = vst [vmem:[#allocation8_spill] sm:$0xff] %v752_v2  ;;  %v99_v4 = vadd.f32 %v752_v2, %v748_v0  ;;  %v760_v6 = vld [vmem:[#allocation2 + $0x108] sm:$0xff]  ;;  %v100_v7 = vadd.f32 %v754_v3, %v750_v1  ;;  %v766_v8 = vmul.f32 %v752_v2, %v752_v2  ;;  %v768_v9 = vld [vmem:[#allocation2 + $0x70] sm:$0xff]  ;;  %v770_v10 = vld [vmem:[#allocation2 + $0x78] sm:$0xff] }
   0x9   :  { %1160 = vst [vmem:[#allocation9_spill] sm:$0xff] %v758_v5  ;;  %v772_v11 = vld [vmem:[#allocation2 + $0x80] sm:$0xff]  ;;  %v775_v13 = vld [vmem:[#allocation2 + $0x88] sm:$0xff]  ;;  %v781_v16 = vld [vmem:[#allocation2 + $0x90] sm:$0xff]  ;;  %v59_v25 = vmul.f32 %v768_v9, %v768_v9  ;;  %v60_v53 = vmul.f32 %v770_v10, %v770_v10 }
   0xa   :  { %1161 = vst [vmem:[#allocation10_spill] sm:$0xff] %v760_v6  ;;  %v147_v12 = vadd.f32 %v758_v5, %v99_v4  ;;  %v95_v14 = vadd.f32 %v772_v11, %v768_v9  ;;  %v107_v15 = vmul.f32 %v772_v11, %v772_v11  ;;  %v783_v17 = vld [vmem:[#allocation2 + $0x98] sm:$0xff]  ;;  %v148_v19 = vadd.f32 %v760_v6, %v100_v7  ;;  %v794_v22 = vld [vmem:[#allocation2] sm:$0xff]  ;;  %v796_v23 = vld [vmem:[#allocation2 + $0x8] sm:$0xff] }
   0xb   :  { %v96_v20 = vadd.f32 %v775_v13, %v770_v10  ;;  %v108_v21 = vmul.f32 %v775_v13, %v775_v13  ;;  %v798_v24 = vld [vmem:[#allocation2 + $0x10] sm:$0xff]  ;;  %v155_v27 = vmul.f32 %v781_v16, %v781_v16  ;;  %v156_v28 = vmul.f32 %v783_v17, %v783_v17  ;;  %v807_v29 = vld [vmem:[#allocation2 + $0x18] sm:$0xff]  ;;  %v811_v31 = vld [vmem:[#allocation2 + $0x20] sm:$0xff] }
   0xc   :  { %v143_v26 = vadd.f32 %v781_v16, %v95_v14  ;;  %v91_v30 = vadd.f32 %v798_v24, %v794_v22  ;;  %v813_v32 = vld [vmem:[#allocation2 + $0x28] sm:$0xff]  ;;  %v211_v33 = vadd.f32 %v148_v19, %v147_v12  ;;  %v92_v35 = vadd.f32 %v807_v29, %v796_v23  ;;  %v820_v37 = vld [vmem:[#allocation2 + $0x118] sm:$0xff]  ;;  %v822_v38 = vld [vmem:[#allocation2 + $0x120] sm:$0xff] }
   0xd   :  { %v144_v34 = vadd.f32 %v783_v17, %v96_v20  ;;  %v103_v36 = vmul.f32 %v798_v24, %v798_v24  ;;  %v824_v39 = vld [vmem:[#allocation2 + $0x128] sm:$0xff]  ;;  %v104_v40 = vmul.f32 %v807_v29, %v807_v29  ;;  %v831_v42 = vmul.f32 %v811_v31, %v811_v31  ;;  %v833_v43 = vld [vmem:[#allocation2 + $0x130] sm:$0xff]  ;;  %v837_v45 = vld [vmem:[#allocation2 + $0x138] sm:$0xff] }
   0xe   :  { %v139_v41 = vadd.f32 %v811_v31, %v91_v30  ;;  %v101_v44 = vadd.f32 %v824_v39, %v820_v37  ;;  %v839_v46 = vld [vmem:[#allocation2 + $0x140] sm:$0xff]  ;;  %212 = vadd.xlane.f32.xlu2 %v211_v33  ;;  %v140_v48 = vadd.f32 %v813_v32, %v92_v35  ;;  %v102_v49 = vadd.f32 %v833_v43, %v822_v38  ;;  %v844_v50 = vld [vmem:[#allocation2 + $0xa8] sm:$0xff]  ;;  %v846_v51 = vld [vmem:[#allocation2 + $0xb0] sm:$0xff] }
   0xf   :  { %v205_v47 = vadd.f32 %v144_v34, %v143_v26  ;;  %1162 = vst [vmem:[#allocation11_spill] sm:$0xff] %v844_v50  ;;  %v848_v52 = vld [vmem:[#allocation2 + $0xb8] sm:$0xff]  ;;  %v152_v54 = vmul.f32 %v813_v32, %v813_v32  ;;  %v855_v56 = vld [vmem:[#allocation2 + $0xc0] sm:$0xff]  ;;  %v859_v58 = vld [vmem:[#allocation2 + $0xc8] sm:$0xff]  ;;  %v119_v60 = vadd.f32 %v107_v15, %v59_v25  ;;  %v120_v14 = vadd.f32 %v108_v21, %v60_v53 }
  0x10   :  { %1163 = vst [vmem:[#allocation12_spill] sm:$0xff] %v846_v51  ;;  %v149_v55 = vadd.f32 %v837_v45, %v101_v44  ;;  %v97_v57 = vadd.f32 %v848_v52, %v844_v50  ;;  %v861_v59 = vld [vmem:[#allocation2 + $0xd0] sm:$0xff]  ;;  %v199_v61 = vadd.f32 %v140_v48, %v139_v41  ;;  %v150_v62 = vadd.f32 %v839_v46, %v102_v49  ;;  %v866_v4 = vld [vmem:[#allocation2 + $0x38] sm:$0xff]  ;;  %v868_v7 = vld [vmem:[#allocation2 + $0x40] sm:$0xff] }
  0x11   :  { %1164 = vst [vmem:[#allocation13_spill] sm:$0xff] %v848_v52  ;;  %206 = vadd.xlane.f32.xlu1 %v205_v47  ;;  %v98_v63 = vadd.f32 %v855_v56, %v846_v51  ;;  %v870_v12 = vld [vmem:[#allocation2 + $0x48] sm:$0xff]  ;;  %v873_v20 = vld [vmem:[#allocation2 + $0x50] sm:$0xff]  ;;  %v877_v25 = vld [vmem:[#allocation2 + $0x58] sm:$0xff]  ;;  %v57_v30 = vmul.f32 %v866_v4, %v866_v4  ;;  %v55_v33 = vmul.f32 %v794_v22, %v794_v22 }
  0x12   :  { %1165 = vst [vmem:[#allocation14_spill] sm:$0xff] %v855_v56  ;;  %v145_v19 = vadd.f32 %v859_v58, %v97_v57  ;;  %v93_v15 = vadd.f32 %v870_v12, %v866_v4  ;;  %v879_v26 = vld [vmem:[#allocation2 + $0x60] sm:$0xff]  ;;  %200 = vadd.xlane.f32.xlu0 %v199_v61  ;;  %v214_v34 = vadd.f32 %v150_v62, %v149_v55 }
  0x13   :  { %1166 = vst [vmem:[#allocation15_spill] sm:$0xff] %v859_v58  ;;  %v146_v21 = vadd.f32 %v861_v59, %v98_v63  ;;  %v94_v35 = vadd.f32 %v873_v20, %v868_v7  ;;  %v167_v41 = vadd.f32 %v155_v27, %v119_v60  ;;  %v58_v47 = vmul.f32 %v868_v7, %v868_v7 }
  0x14   :  { %1167 = vst [vmem:[#allocation16_spill] sm:$0xff] %v861_v59  ;;  %v141_v44 = vadd.f32 %v877_v25, %v93_v15  ;;  %v105_v48 = vmul.f32 %v870_v12, %v870_v12  ;;  %v106_v49 = vmul.f32 %v873_v20, %v873_v20  ;;  %v168_v57 = vadd.f32 %v156_v28, %v120_v14 }
  0x15   :  { %v208_v53 = vadd.f32 %v146_v21, %v145_v19  ;;  %v142_v55 = vadd.f32 %v879_v26, %v94_v35  ;;  %v153_v61 = vmul.f32 %v877_v25, %v877_v25  ;;  %v154_v60 = vmul.f32 %v879_v26, %v879_v26 }
  0x16   :  { %v117_v62 = vadd.f32 %v105_v48, %v57_v30  ;;  %v118_v27 = vadd.f32 %v106_v49, %v58_v47  ;;  %v56_v63 = vmul.f32 %v796_v23, %v796_v23  ;;  %215 = vadd.xlane.f32.xlu2 %v214_v34  ;;  %v115_v2 = vadd.f32 %v103_v36, %v55_v33 }
  0x17   :  { %v202_v15 = vadd.f32 %v142_v55, %v141_v44  ;;  %v65_v19 = vmul.f32 %v820_v37, %v820_v37  ;;  %v66_v28 = vmul.f32 %v822_v38, %v822_v38  ;;  %v112_v14 = vmul.f32 %v754_v3, %v754_v3 }
  0x18   :  { %v116_v30 = vadd.f32 %v104_v40, %v56_v63  ;;  %v113_v21 = vmul.f32 %v824_v39, %v824_v39  ;;  %v64_v35 = vmul.f32 %v750_v1, %v750_v1  ;;  %v165_v34 = vadd.f32 %v153_v61, %v117_v62 }
  0x19   :  { %209 = vadd.xlane.f32.xlu1 %v208_v53  ;;  %v166_v44 = vadd.f32 %v154_v60, %v118_v27  ;;  %v163_v36 = vadd.f32 %v831_v42, %v115_v2  ;;  %v114_v33 = vmul.f32 %v833_v43, %v833_v43  ;;  %v161_v49 = vmul.f32 %v837_v45, %v837_v45 }
  0x1a   :  { %v164_v47 = vadd.f32 %v152_v54, %v116_v30  ;;  %v125_v48 = vadd.f32 %v113_v21, %v65_v19  ;;  %v162_v40 = vmul.f32 %v839_v46, %v839_v46  ;;  %203 = vadd.xlane.f32.xlu0 %v202_v15  ;;  %v223_v55 = vadd.f32 %v168_v57, %v167_v41 }
  0x1b   :  { %v126_v63 = vadd.f32 %v114_v33, %v66_v28  ;;  %v61_v53 = vmul.f32 %v844_v50, %v844_v50  ;;  %v62_v2 = vmul.f32 %v846_v51, %v846_v51  ;;  %v159_v42 = vmul.f32 %v758_v5, %v758_v5 }
  0x1c   :  { %v160_v54 = vmul.f32 %v760_v6, %v760_v6  ;;  %v109_v61 = vmul.f32 %v848_v52, %v848_v52  ;;  %v220_v62 = vadd.f32 %v166_v44, %v165_v34  ;;  %v123_v41 = vadd.f32 %v766_v8, %v787_v18 }
  0x1d   :  { %v124_v57 = vadd.f32 %v112_v14, %v64_v35  ;;  %v110_v27 = vmul.f32 %v855_v56, %v855_v56  ;;  %v217_v60 = vadd.f32 %v164_v47, %v163_v36  ;;  %v173_v15 = vadd.f32 %v161_v49, %v125_v48  ;;  %v937_v47 = vld [vmem:[#allocation2 + $0xa0] sm:$0xff]  ;;  %v939_v48 = vld [vmem:[#allocation2 + $0x68] sm:$0xff] }
  0x1e   :  { %v174_v19 = vadd.f32 %v162_v40, %v126_v63  ;;  %224 = vadd.xlane.f32.xlu2 %v223_v55  ;;  %v121_v28 = vadd.f32 %v109_v61, %v61_v53  ;;  %v157_v21 = vmul.f32 %v859_v58, %v859_v58  ;;  %v158_v33 = vmul.f32 %v861_v59, %v861_v59  ;;  %v943_v40 = vld [vmem:[#allocation2 + $0x30] sm:$0xff]  ;;  %v949_v53 = vld [vmem:[#allocation2 + $0x148] sm:$0xff] }
  0x1f   :  { %v122_v30 = vadd.f32 %v110_v27, %v62_v2  ;;  %v171_v34 = vadd.f32 %v159_v42, %v123_v41  ;;  %v172_v44 = vadd.f32 %v160_v54, %v124_v57  ;;  %v242_v49 = vsel %vm235_vm0, %v937_v47, 0.0  ;;  %v951_v2 = vld [vmem:[#allocation2 + $0x110] sm:$0xff]  ;;  %v955_v54 = vld [vmem:[#allocation2 + $0xd8] sm:$0xff] }
  0x20   :  { %v232_v8 = vadd.f32 %v174_v19, %v173_v15  ;;  %v169_v18 = vadd.f32 %v157_v21, %v121_v28  ;;  %v239_v55 = vsel %vm235_vm0, %v939_v48, 0.0  ;;  %v236_v63 = vsel %vm235_vm0, %v943_v40, 0.0  ;;  %1168 = vst [vmem:[#allocation17_spill] sm:$0xff] %v951_v2 }
  0x21   :  { %221 = vadd.xlane.f32.xlu1 %v220_v62  ;;  %v170_v14 = vadd.f32 %v158_v33, %v122_v30  ;;  %v229_v35 = vadd.f32 %v172_v44, %v171_v34  ;;  %v251_v42 = vsel %vm235_vm0, %v949_v53, 0.0  ;;  %1169 = vst [vmem:[#allocation18_spill] sm:$0xff] %v955_v54  ;;  %v248_v61 = vsel %vm235_vm0, %v951_v2, 0.0 }
  0x22   :  { %218 = vadd.xlane.f32.xlu0 %v217_v60  ;;  %v245_v62 = vsel %vm235_vm0, %v955_v54, 0.0  ;;  %v189_v41 = vmul.f32 %v937_v47, %v937_v47  ;;  %v188_v57 = vmul.f32 %v939_v48, %v939_v48  ;;  %v187_v60 = vmul.f32 %v943_v40, %v943_v40 }
  0x23   :  { %v226_v36 = vadd.f32 %v170_v14, %v169_v18  ;;  %v192_v28 = vmul.f32 %v949_v53, %v949_v53  ;;  %v191_v30 = vmul.f32 %v951_v2, %v951_v2  ;;  %v190_v33 = vmul.f32 %v955_v54, %v955_v54 }
  0x24   :  { %v266_v27 = vsel %vm235_vm0, %v189_v41, 0.0  ;;  %v263_v15 = vsel %vm235_vm0, %v188_v57, 0.0  ;;  %v260_v19 = vsel %vm235_vm0, %v187_v60, 0.0  ;;  %v720_v52 = vmov 0  }
  0x25   :  { %v275_v21 = vsel %vm235_vm0, %v192_v28, 0.0  ;;  %v272_v34 = vsel %vm235_vm0, %v191_v30, 0.0  ;;  %v269_v44 = vsel %vm235_vm0, %v190_v33, 0.0  ;;  %652 = vset.pattern.permute.xlu2 %v720_v52  ;;  %651 = vset.pattern.permute.xlu1 %v720_v52 }
  0x26   :  { %233 = vadd.xlane.f32.xlu2 %v232_v8  ;;  %650 = vset.pattern.permute.xlu0 %v720_v52 }
  0x29   :  { %230 = vadd.xlane.f32.xlu1 %v229_v35 }
  0x2a   :  { %227 = vadd.xlane.f32.xlu0 %v226_v36 }
  0x2e   :  { %243 = vadd.xlane.f32.xlu2 %v242_v49 }
  0x31   :  { %240 = vadd.xlane.f32.xlu1 %v239_v55 }
  0x32   :  { %237 = vadd.xlane.f32.xlu0 %v236_v63 }
  0x36   :  { %252 = vadd.xlane.f32.xlu2 %v251_v42 }
  0x39   :  { %249 = vadd.xlane.f32.xlu1 %v248_v61 }
  0x3a   :  { %246 = vadd.xlane.f32.xlu0 %v245_v62 }
  0x3e   :  { %267 = vadd.xlane.f32.xlu2 %v266_v27 }
  0x41   :  { %264 = vadd.xlane.f32.xlu1 %v263_v15 }
  0x42   :  { %261 = vadd.xlane.f32.xlu0 %v260_v19 }
  0x46   :  { %276 = vadd.xlane.f32.xlu2 %v275_v21 }
  0x49   :  { %273 = vadd.xlane.f32.xlu1 %v272_v34 }
  0x4a   :  { %270 = vadd.xlane.f32.xlu0 %v269_v44 }
  0x81   :  { %v213_v8 = vpop.xlane.xlu2 %212 }
  0x84   :  { %v207_v18 = vpop.xlane.xlu1 %206 }
  0x85   :  { %v201_v14 = vpop.xlane.xlu0 %200 }
  0x89   :  { %v216_v35 = vpop.xlane.xlu2 %215 }
  0x8c   :  { %v210_v36 = vpop.xlane.xlu1 %209 }
  0x8d   :  { %v204_v49 = vpop.xlane.xlu0 %203 }
  0x91   :  { %v225_v55 = vpop.xlane.xlu2 %224 }
  0x94   :  { %v222_v63 = vpop.xlane.xlu1 %221 }
  0x95   :  { %v219_v42 = vpop.xlane.xlu0 %218 }
  0x99   :  { %v234_v61 = vpop.xlane.xlu2 %233 }
  0x9c   :  { %v231_v62 = vpop.xlane.xlu1 %230 }
  0x9d   :  { %v228_v41 = vpop.xlane.xlu0 %227 }
  0xa1   :  { %v244_v57 = vpop.xlane.xlu2 %243 }
  0xa2   :  { %v256_v28 = vadd.f32 %v244_v57, %v207_v18 }
  0xa4   :  { %v241_v27 = vpop.xlane.xlu1 %240  ;;  %v979_v33 = vmul.f32 0.0012755102, %v256_v28 }
  0xa5   :  { %v238_v60 = vpop.xlane.xlu0 %237  ;;  %v255_v21 = vadd.f32 %v241_v27, %v204_v49 }
  0xa6   :  { %v254_v34 = vadd.f32 %v238_v60, %v201_v14  ;;  %v298_v51 = vmul.f32 %v979_v33, %v979_v33 }
  0xa7   :  { %v981_v54 = vmul.f32 0.0012755102, %v255_v21 }
  0xa8   :  { %v985_v50 = vmul.f32 0.0012755102, %v254_v34 }
  0xa9   :  { %v253_v15 = vpop.xlane.xlu2 %252  ;;  %v297_v14 = vmul.f32 %v981_v54, %v981_v54 }
  0xaa   :  { %v259_v58 = vadd.f32 %v253_v15, %v216_v35  ;;  %v296_v21 = vmul.f32 %v985_v50, %v985_v50 }
  0xac   :  { %v250_v19 = vpop.xlane.xlu1 %249  ;;  %v989_v35 = vmul.f32 0.0012755102, %v259_v58 }
  0xad   :  { %v247_v30 = vpop.xlane.xlu0 %246  ;;  %v258_v15 = vadd.f32 %v250_v19, %v213_v8 }
  0xae   :  { %v257_v28 = vadd.f32 %v247_v30, %v210_v36 }
  0xb0   :  { %v997_v58 = vmul.f32 0.0012755102, %v257_v28 }
  0xb1   :  { %v268_v44 = vpop.xlane.xlu2 %267 }
  0xb2   :  { %v280_v59 = vadd.f32 %v268_v44, %v225_v55 }
  0xb4   :  { %v265_v56 = vpop.xlane.xlu1 %264  ;;  %v292_v18 = vmul.f32 0.0012755102, %v280_v59 }
  0xb5   :  { %v279_v57 = vadd.f32 %v265_v56, %v222_v63  ;;  %v262_v49 = vpop.xlane.xlu0 %261 }
  0xb6   :  { %v304_v27 = vsub.f32 %v292_v18, %v298_v51  ;;  %v278_v55 = vadd.f32 %v262_v49, %v219_v42  ;;  %v301_v51 = vmul.f32 %v989_v35, %v989_v35  ;;  %v995_v18 = vmul.f32 0.0012755102, %v258_v15 }
  0xb7   :  { %v291_v60 = vmul.f32 0.0012755102, %v279_v57 }
  0xb8   :  { %v310_v44 = vmax.f32 %v304_v27, 0.0  ;;  %v290_v2 = vmul.f32 0.0012755102, %v278_v55 }
  0xb9   :  { %v303_v34 = vsub.f32 %v291_v60, %v297_v14  ;;  %v277_v59 = vpop.xlane.xlu2 %276  ;;  %v299_v60 = vmul.f32 %v997_v58, %v997_v58 }
  0xba   :  { %v316_v56 = vadd.f32 1e-05, %v310_v44  ;;  %v302_v63 = vsub.f32 %v290_v2, %v296_v21  ;;  %v283_v6 = vadd.f32 %v277_v59, %v234_v61  ;;  %v300_v2 = vmul.f32 %v995_v18, %v995_v18 }
  0xbb   :  { %v309_v52 = vmax.f32 %v303_v34, 0.0 }
  0xbc   :  { %v274_v8 = vpop.xlane.xlu1 %273  ;;  %653 = vrsqrt.f32 %v316_v56  ;;  %v308_v42 = vmax.f32 %v302_v63, 0.0  ;;  %v295_v19 = vmul.f32 0.0012755102, %v283_v6  ;;  %vm346_vm2 = vweird.f32 %v316_v56 }
  0xbd   :  { %v315_v36 = vadd.f32 1e-05, %v309_v52  ;;  %v282_v30 = vadd.f32 %v274_v8, %v231_v62  ;;  %v271_v57 = vpop.xlane.xlu0 %270 }
  0xbe   :  { %v314_v49 = vadd.f32 1e-05, %v308_v42  ;;  %v307_v14 = vsub.f32 %v295_v19, %v301_v51  ;;  %v281_v27 = vadd.f32 %v271_v57, %v228_v41 }
  0xbf   :  { %655 = vrsqrt.f32 %v315_v36  ;;  %v294_v61 = vmul.f32 0.0012755102, %v282_v30  ;;  %vm336_vm5 = vweird.f32 %v315_v36 }
  0xc0   :  { %657 = vrsqrt.f32 %v314_v49  ;;  %v313_v55 = vmax.f32 %v307_v14, 0.0  ;;  %v293_v15 = vmul.f32 0.0012755102, %v281_v27  ;;  %vm326_vm8 = vweird.f32 %v314_v49 }
  0xc1   :  { %v306_v28 = vsub.f32 %v294_v61, %v300_v2 }
  0xc2   :  { %v654_v21 = vpop.eup %653  ;;  %v1003_v44 = vadd.f32 1e-05, %v313_v55  ;;  %v305_v6 = vsub.f32 %v293_v15, %v299_v60 }
  0xc3   :  { %v341_v62 = vmul.f32 %v654_v21, %v316_v56  ;;  %v312_v34 = vmax.f32 %v306_v28, 0.0  ;;  %vm347_vm1 = vweird.f32 %v654_v21  ;;  %v382_v28 = vld [vmem:[%s1145_s1 + $0x10] sm:$0xff]  ;;  %v381_v56 = vld [vmem:[%s1145_s1 + $0x8] sm:$0xff] }
  0xc4   :  { %659 = vrsqrt.f32 %v1003_v44  ;;  %v311_v41 = vmax.f32 %v305_v6, 0.0  ;;  %vm348_vm4 = vmor %vm346_vm2, %vm347_vm1  ;;  %vm376_vm2 = vweird.f32 %v1003_v44 }
  0xc5   :  { %v656_v59 = vpop.eup %655  ;;  %v342_v52 = vmul.f32 %v654_v21, %v341_v62  ;;  %v318_v51 = vadd.f32 1e-05, %v312_v34 }
  0xc6   :  { %v331_v63 = vmul.f32 %v656_v59, %v315_v36  ;;  %v658_v8 = vpop.eup %657  ;;  %v1006_v42 = vadd.f32 1e-05, %v311_v41  ;;  %vm337_vm3 = vweird.f32 %v656_v59 }
  0xc7   :  { %v343_v19 = vmul.f32 0.5, %v342_v52  ;;  %v321_v57 = vmul.f32 %v658_v8, %v314_v49  ;;  %661 = vrsqrt.f32 %v318_v51  ;;  %vm327_vm6 = vweird.f32 %v658_v8  ;;  %vm338_vm7 = vmor %vm336_vm5, %vm337_vm3 }
  0xc8   :  { %v332_v30 = vmul.f32 %v656_v59, %v331_v63  ;;  %663 = vrsqrt.f32 %v1006_v42  ;;  %vm328_vm9 = vmor %vm326_vm8, %vm327_vm6  ;;  %vm366_vm12 = vweird.f32 %v318_v51  ;;  %vm356_vm14 = vweird.f32 %v1006_v42 }
  0xc9   :  { %v322_v27 = vmul.f32 %v658_v8, %v321_v57  ;;  %v344_v2 = vsub.f32 1.5, %v343_v19 }
  0xca   :  { %v333_v14 = vmul.f32 0.5, %v332_v30  ;;  %v1009_v61 = vpop.eup %659 }
  0xcb   :  { %v323_v60 = vmul.f32 0.5, %v322_v27  ;;  %v371_v55 = vmul.f32 %v1009_v61, %v1003_v44  ;;  %v345_v15 = vmul.f32 %v654_v21, %v344_v2  ;;  %vm377_vm1 = vweird.f32 %v1009_v61 }
  0xcc   :  { %v334_v6 = vsub.f32 1.5, %v333_v14  ;;  %vm378_vm3 = vmor %vm376_vm2, %vm377_vm1 }
  0xcd   :  { %v662_v62 = vpop.eup %661  ;;  %v349_v34 = vsel %vm348_vm4, %v654_v21, %v345_v15  ;;  %v324_v52 = vsub.f32 1.5, %v323_v60  ;;  %v372_v57 = vmul.f32 %v1009_v61, %v371_v55  ;;  %v380_v21 = vld [vmem:[%s1145_s1] sm:$0xff] }
  0xce   :  { %v335_v41 = vmul.f32 %v656_v59, %v334_v6  ;;  %v664_v63 = vpop.eup %663  ;;  %v361_v19 = vmul.f32 %v662_v62, %v318_v51  ;;  %v388_v30 = vmul.f32 %v382_v28, %v349_v34  ;;  %vm367_vm10 = vweird.f32 %v662_v62 }
  0xcf   :  { %v351_v14 = vmul.f32 %v664_v63, %v1006_v42  ;;  %v325_v27 = vmul.f32 %v658_v8, %v324_v52  ;;  %v373_v49 = vmul.f32 0.5, %v372_v57  ;;  %vm357_vm11 = vweird.f32 %v664_v63  ;;  %v384_v52 = vld [vmem:[%s1145_s1 + $0x20] sm:$0xff]  ;;  %vm368_vm13 = vmor %vm366_vm12, %vm367_vm10 }
  0xd0   :  { %v339_v36 = vsel %vm338_vm7, %v656_v59, %v335_v41  ;;  %v362_v2 = vmul.f32 %v662_v62, %v361_v19  ;;  %422 = vperm.xlu2 %652, %v388_v30   ;;  %vm358_vm15 = vmor %vm356_vm14, %vm357_vm11 }
  0xd1   :  { %v387_v60 = vmul.f32 %v381_v56, %v339_v36  ;;  %v352_v15 = vmul.f32 %v664_v63, %v351_v14  ;;  %v329_v6 = vsel %vm328_vm9, %v658_v8, %v325_v27  ;;  %v393_v8 = vld [vmem:[%s1146_s2 + $0x8] sm:$0xff]  ;;  %v374_v57 = vsub.f32 1.5, %v373_v49 }
  0xd2   :  { %v363_v28 = vmul.f32 0.5, %v362_v2  ;;  %v386_v34 = vmul.f32 %v380_v21, %v329_v6 }
  0xd3   :  { %417 = vperm.xlu1 %651, %v387_v60   ;;  %v353_v5 = vmul.f32 0.5, %v352_v15  ;;  %v399_v56 = vmul.f32 %v387_v60, %v981_v54  ;;  %v375_v54 = vmul.f32 %v1009_v61, %v374_v57  ;;  %v385_v15 = vld [vmem:[%s1145_s1 + $0x28] sm:$0xff] }
  0xd4   :  { %412 = vperm.xlu0 %650, %v386_v34   ;;  %v364_v55 = vsub.f32 1.5, %v363_v28  ;;  %v398_v42 = vmul.f32 %v386_v34, %v985_v50  ;;  %v400_v28 = vmul.f32 %v388_v30, %v979_v33  ;;  %v395_v34 = vld [vmem:[%s1146_s2 + $0x18] sm:$0xff] }
  0xd5   :  { %v354_v59 = vsub.f32 1.5, %v353_v5  ;;  %v383_v5 = vld [vmem:[%s1145_s1 + $0x18] sm:$0xff]  ;;  %v405_v27 = vsub.f32 %v393_v8, %v399_v56  ;;  %v379_v60 = vsel %vm378_vm3, %v1009_v61, %v375_v54  ;;  %v394_v61 = vld [vmem:[%s1146_s2 + $0x10] sm:$0xff] }
  0xd6   :  { %v365_v41 = vmul.f32 %v662_v62, %v364_v55  ;;  %v391_v44 = vmul.f32 %v385_v15, %v379_v60  ;;  %v406_v55 = vsub.f32 %v394_v61, %v400_v28 }
  0xd7   :  { %v355_v19 = vmul.f32 %v664_v63, %v354_v59 }
  0xd8   :  { %v369_v51 = vsel %vm368_vm13, %v662_v62, %v365_v41  ;;  %v392_v62 = vld [vmem:[%s1146_s2] sm:$0xff]  ;;  %v403_v59 = vmul.f32 %v391_v44, %v989_v35 }
  0xd9   :  { %v390_v14 = vmul.f32 %v384_v52, %v369_v51  ;;  %v359_v36 = vsel %vm358_vm15, %v664_v63, %v355_v19  ;;  %v396_v63 = vld [vmem:[%s1146_s2 + $0x20] sm:$0xff]  ;;  %v404_v50 = vsub.f32 %v392_v62, %v398_v42 }
  0xda   :  { %v389_v21 = vmul.f32 %v383_v5, %v359_v36 }
  0xdb   :  { %432 = vperm.xlu1 %651, %v390_v14   ;;  %v402_v2 = vmul.f32 %v390_v14, %v995_v18 }
  0xdc   :  { %459 = vperm.xlu0 %650, %v405_v27   ;;  %427 = vperm.xlu2 %652, %v389_v21   ;;  %v401_v18 = vmul.f32 %v389_v21, %v997_v58  ;;  %v397_v58 = vld [vmem:[%s1146_s2 + $0x28] sm:$0xff]  ;;  %s721_s2 = smov [#allocation5]  }
  0xdd   :  { %v408_v6 = vsub.f32 %v396_v63, %v402_v2  ;;  %v409_v41 = vsub.f32 %v397_v58, %v403_v59  ;;  %s630_s14 = sshll.u32 %s721_s2, 4  ;;  %s631_s14 = int_to_ptr.vmem [resolvable:$true] %s630_s14 }
  0xde   :  { %v407_v49 = vsub.f32 %v395_v34, %v401_v18 }
  0xe3   :  { %454 = vperm.xlu1 %651, %v404_v50  }
  0xe4   :  { %474 = vperm.xlu0 %650, %v408_v6   ;;  %437 = vperm.xlu2 %652, %v391_v44  }
  0xeb   :  { %469 = vperm.xlu1 %651, %v407_v49  }
  0xec   :  { %464 = vperm.xlu2 %652, %v406_v55  }
  0xf4   :  { %479 = vperm.xlu2 %652, %v409_v41  }
 0x12a   :  { %v423_v33 = vpop.permute.xlu2 %422 }
 0x12b   :  { %v444_v8 = vmul.f32 %v423_v33, %v768_v9  ;;  %v445_v19 = vmul.f32 %v423_v33, %v770_v10  ;;  %v522_v5 = vmul.f32 %v423_v33, %v772_v11  ;;  %v523_v57 = vmul.f32 %v423_v33, %v775_v13 }
 0x12c   :  { %v570_v51 = vmul.f32 %v423_v33, %v781_v16  ;;  %v571_v54 = vmul.f32 %v423_v33, %v783_v17  ;;  %v610_v2 = vmul.f32 %v423_v33, %v937_v47 }
 0x136   :  { %v1063_v30 = vpop.permute.xlu2 %427 }
 0x13e   :  { %v438_v52 = vpop.permute.xlu2 %437 }
 0x13f   :  { %v450_v13 = vmul.f32 %v438_v52, %v820_v37  ;;  %v451_v16 = vmul.f32 %v438_v52, %v822_v38  ;;  %v528_v62 = vmul.f32 %v438_v52, %v824_v39  ;;  %v529_v17 = vmul.f32 %v438_v52, %v833_v43 }
 0x140   :  { %v576_v60 = vmul.f32 %v438_v52, %v837_v45  ;;  %v577_v44 = vmul.f32 %v438_v52, %v839_v46  ;;  %v613_v38 = vmul.f32 %v438_v52, %v949_v53 }
 0x145   :  { %v418_v56 = vpop.permute.xlu1 %417 }
 0x146   :  { %v465_v35 = vpop.permute.xlu2 %464  ;;  %v1070_v21 = vpop.permute.xlu0 %412  ;;  %v442_v28 = vmul.f32 %v418_v56, %v866_v4  ;;  %v443_v34 = vmul.f32 %v418_v56, %v868_v7  ;;  %v520_v45 = vmul.f32 %v418_v56, %v870_v12  ;;  %v521_v46 = vmul.f32 %v418_v56, %v873_v20 }
 0x147   :  { %v486_v14 = vadd.f32 %v465_v35, %v444_v8  ;;  %v487_v36 = vadd.f32 %v465_v35, %v445_v19  ;;  %v534_v27 = vadd.f32 %v522_v5, %v465_v35  ;;  %v535_v42 = vadd.f32 %v523_v57, %v465_v35 }
 0x148   :  { %v582_v9 = vadd.f32 %v570_v51, %v465_v35  ;;  %v583_v10 = vadd.f32 %v571_v54, %v465_v35  ;;  %v616_v11 = vadd.f32 %v610_v2, %v465_v35  ;;  %v568_v53 = vmul.f32 %v418_v56, %v877_v25  ;;  %v1171_v54 = vld [vmem:[#allocation9_spill] sm:$0xff]  ;;  %v1172_v2 = vld [vmem:[#allocation10_spill] sm:$0xff] }
 0x149   :  { %498 = vst [vmem:[#allocation5 + $0x70] sm:$0xff] %v486_v14  ;;  %v569_v4 = vmul.f32 %v418_v56, %v879_v26  ;;  %v609_v7 = vmul.f32 %v418_v56, %v939_v48  ;;  %v440_v33 = vmul.f32 %v1070_v21, %v794_v22  ;;  %v441_v25 = vmul.f32 %v1070_v21, %v796_v23 }
 0x14a   :  { %499 = vst [vmem:[#allocation5 + $0x78] sm:$0xff] %v487_v36  ;;  %v518_v26 = vmul.f32 %v1070_v21, %v798_v24  ;;  %v519_v48 = vmul.f32 %v1070_v21, %v807_v29  ;;  %v566_v22 = vmul.f32 %v1070_v21, %v811_v31  ;;  %v567_v23 = vmul.f32 %v1070_v21, %v813_v32  ;;  %v1170_v32 = vld [vmem:[#allocation8_spill] sm:$0xff] }
 0x14b   :  { %546 = vst [vmem:[#allocation5 + $0x80] sm:$0xff] %v534_v27  ;;  %v608_v24 = vmul.f32 %v1070_v21, %v943_v40 }
 0x14c   :  { %547 = vst [vmem:[#allocation5 + $0x88] sm:$0xff] %v535_v42 }
 0x14d   :  { %594 = vst [vmem:[#allocation5 + $0x90] sm:$0xff] %v582_v9  ;;  %v1077_v63 = vpop.permute.xlu1 %432 }
 0x14e   :  { %595 = vst [vmem:[#allocation5 + $0x98] sm:$0xff] %v583_v10  ;;  %v480_v47 = vpop.permute.xlu2 %479  ;;  %v460_v18 = vpop.permute.xlu0 %459  ;;  %v448_v51 = vmul.f32 %v1077_v63, %v748_v0  ;;  %v449_v14 = vmul.f32 %v1077_v63, %v750_v1  ;;  %v526_v36 = vmul.f32 %v1077_v63, %v1170_v32  ;;  %v527_v40 = vmul.f32 %v1077_v63, %v754_v3  ;;  %v1173_v10 = vld [vmem:[#allocation17_spill] sm:$0xff] }
 0x14f   :  { %622 = vst.msk [vmem:[#allocation5 + $0xa0] sm:$0xff] %vm235_vm0, %v616_v11  ;;  %v492_v15 = vadd.f32 %v480_v47, %v450_v13  ;;  %v493_v50 = vadd.f32 %v480_v47, %v451_v16  ;;  %v540_v6 = vadd.f32 %v528_v62, %v480_v47  ;;  %v541_v37 = vadd.f32 %v529_v17, %v480_v47  ;;  %v1174_v62 = vld [vmem:[#allocation11_spill] sm:$0xff] }
 0x150   :  { %v588_v39 = vadd.f32 %v576_v60, %v480_v47  ;;  %v589_v43 = vadd.f32 %v577_v44, %v480_v47  ;;  %v619_v61 = vadd.f32 %v613_v38, %v480_v47  ;;  %v484_v49 = vadd.f32 %v460_v18, %v442_v28  ;;  %v1175_v60 = vld [vmem:[#allocation12_spill] sm:$0xff] }
 0x151   :  { %504 = vst [vmem:[#allocation5 + $0x118] sm:$0xff] %v492_v15  ;;  %v485_v55 = vadd.f32 %v460_v18, %v443_v34  ;;  %v532_v59 = vadd.f32 %v520_v45, %v460_v18  ;;  %v533_v58 = vadd.f32 %v521_v46, %v460_v18  ;;  %v580_v41 = vadd.f32 %v568_v53, %v460_v18  ;;  %v1180_v45 = vld [vmem:[#allocation18_spill] sm:$0xff] }
 0x152   :  { %505 = vst [vmem:[#allocation5 + $0x120] sm:$0xff] %v493_v50  ;;  %v581_v20 = vadd.f32 %v569_v4, %v460_v18  ;;  %v615_v52 = vadd.f32 %v609_v7, %v460_v18  ;;  %v574_v42 = vmul.f32 %v1077_v63, %v1171_v54  ;;  %v575_v1 = vmul.f32 %v1077_v63, %v1172_v2  ;;  %v1176_v50 = vld [vmem:[#allocation13_spill] sm:$0xff] }
 0x153   :  { %552 = vst [vmem:[#allocation5 + $0x128] sm:$0xff] %v540_v6  ;;  %v612_v11 = vmul.f32 %v1077_v63, %v1173_v10  ;;  %v446_v17 = vmul.f32 %v1063_v30, %v1174_v62  ;;  %v447_v15 = vmul.f32 %v1063_v30, %v1175_v60  ;;  %v524_v6 = vmul.f32 %v1063_v30, %v1176_v50  ;;  %v1177_v63 = vld [vmem:[#allocation14_spill] sm:$0xff] }
 0x154   :  { %553 = vst [vmem:[#allocation5 + $0x130] sm:$0xff] %v541_v37  ;;  %v525_v37 = vmul.f32 %v1063_v30, %v1177_v63 }
 0x155   :  { %600 = vst [vmem:[#allocation5 + $0x138] sm:$0xff] %v588_v39  ;;  %v455_v12 = vpop.permute.xlu1 %454  ;;  %v1178_v39 = vld [vmem:[#allocation15_spill] sm:$0xff] }
 0x156   :  { %601 = vst [vmem:[#allocation5 + $0x140] sm:$0xff] %v589_v43  ;;  %v482_v8 = vadd.f32 %v455_v12, %v440_v33  ;;  %v483_v56 = vadd.f32 %v455_v12, %v441_v25  ;;  %v530_v19 = vadd.f32 %v518_v26, %v455_v12  ;;  %v531_v5 = vadd.f32 %v519_v48, %v455_v12  ;;  %v475_v35 = vpop.permute.xlu0 %474  ;;  %v1179_v43 = vld [vmem:[#allocation16_spill] sm:$0xff] }
 0x157   :  { %625 = vst.msk [vmem:[#allocation5 + $0x148] sm:$0xff] %vm235_vm0, %v619_v61  ;;  %v578_v57 = vadd.f32 %v566_v22, %v455_v12  ;;  %v579_v29 = vadd.f32 %v567_v23, %v455_v12  ;;  %v614_v31 = vadd.f32 %v608_v24, %v455_v12  ;;  %v490_v27 = vadd.f32 %v475_v35, %v448_v51 }
 0x158   :  { %496 = vst [vmem:[#allocation5 + $0x38] sm:$0xff] %v484_v49  ;;  %v491_v21 = vadd.f32 %v475_v35, %v449_v14  ;;  %v538_v0 = vadd.f32 %v526_v36, %v475_v35  ;;  %v539_v9 = vadd.f32 %v527_v40, %v475_v35  ;;  %v586_v13 = vadd.f32 %v574_v42, %v475_v35 }
 0x159   :  { %497 = vst [vmem:[#allocation5 + $0x40] sm:$0xff] %v485_v55  ;;  %v587_v3 = vadd.f32 %v575_v1, %v475_v35  ;;  %v618_v47 = vadd.f32 %v612_v11, %v475_v35  ;;  %v572_v18 = vmul.f32 %v1063_v30, %v1178_v39  ;;  %v573_v34 = vmul.f32 %v1063_v30, %v1179_v43 }
 0x15a   :  { %544 = vst [vmem:[#allocation5 + $0x48] sm:$0xff] %v532_v59  ;;  %v611_v49 = vmul.f32 %v1063_v30, %v1180_v45 }
 0x15b   :  { %545 = vst [vmem:[#allocation5 + $0x50] sm:$0xff] %v533_v58 }
 0x15c   :  { %592 = vst [vmem:[#allocation5 + $0x58] sm:$0xff] %v580_v41 }
 0x15d   :  { %593 = vst [vmem:[#allocation5 + $0x60] sm:$0xff] %v581_v20  ;;  %v470_v16 = vpop.permute.xlu1 %469 }
 0x15e   :  { %621 = vst.msk [vmem:[#allocation5 + $0x68] sm:$0xff] %vm235_vm0, %v615_v52  ;;  %v488_v44 = vadd.f32 %v470_v16, %v446_v17  ;;  %v489_v38 = vadd.f32 %v470_v16, %v447_v15  ;;  %v536_v28 = vadd.f32 %v524_v6, %v470_v16  ;;  %v537_v61 = vadd.f32 %v525_v37, %v470_v16 }
 0x15f   :  { %494 = vst [vmem:[#allocation5] sm:$0xff] %v482_v8  ;;  %v584_v46 = vadd.f32 %v572_v18, %v470_v16  ;;  %v585_v55 = vadd.f32 %v573_v34, %v470_v16  ;;  %v617_v53 = vadd.f32 %v611_v49, %v470_v16 }
 0x160   :  { %495 = vst [vmem:[#allocation5 + $0x8] sm:$0xff] %v483_v56 }
 0x161   :  { %542 = vst [vmem:[#allocation5 + $0x10] sm:$0xff] %v530_v19 }
 0x162   :  { %543 = vst [vmem:[#allocation5 + $0x18] sm:$0xff] %v531_v5 }
 0x163   :  { %590 = vst [vmem:[#allocation5 + $0x20] sm:$0xff] %v578_v57 }
 0x164   :  { %591 = vst [vmem:[#allocation5 + $0x28] sm:$0xff] %v579_v29 }
 0x165   :  { %620 = vst.msk [vmem:[#allocation5 + $0x30] sm:$0xff] %vm235_vm0, %v614_v31 }
 0x166   :  { %502 = vst [vmem:[#allocation5 + $0xe0] sm:$0xff] %v490_v27 }
 0x167   :  { %503 = vst [vmem:[#allocation5 + $0xe8] sm:$0xff] %v491_v21 }
 0x168   :  { %550 = vst [vmem:[#allocation5 + $0xf0] sm:$0xff] %v538_v0 }
 0x169   :  { %551 = vst [vmem:[#allocation5 + $0xf8] sm:$0xff] %v539_v9 }
 0x16a   :  { %598 = vst [vmem:[#allocation5 + $0x100] sm:$0xff] %v586_v13 }
 0x16b   :  { %599 = vst [vmem:[#allocation5 + $0x108] sm:$0xff] %v587_v3 }
 0x16c   :  { %624 = vst.msk [vmem:[#allocation5 + $0x110] sm:$0xff] %vm235_vm0, %v618_v47 }
 0x16d   :  { %500 = vst [vmem:[#allocation5 + $0xa8] sm:$0xff] %v488_v44 }
 0x16e   :  { %501 = vst [vmem:[#allocation5 + $0xb0] sm:$0xff] %v489_v38 }
 0x16f   :  { %548 = vst [vmem:[#allocation5 + $0xb8] sm:$0xff] %v536_v28 }
 0x170   :  { %549 = vst [vmem:[#allocation5 + $0xc0] sm:$0xff] %v537_v61 }
 0x171   :  { %596 = vst [vmem:[#allocation5 + $0xc8] sm:$0xff] %v584_v46 }
 0x172   :  { %597 = vst [vmem:[#allocation5 + $0xd0] sm:$0xff] %v585_v55 }
 0x173   :  { %623 = vst.msk [vmem:[#allocation5 + $0xd8] sm:$0xff] %vm235_vm0, %v617_v53 }
 0x174   :  { %638 = dma.vmem_to_hbm [thread:$0]  %s631_s14, 5376, %s633_s0, [#allocation4], %s718_s17, %s718_s17, %s719_s18  }
 0x175   :  { %715 = dma.done.wait [#allocation4], 5376  }
 0x176   :  { %716 = vsyncadd [#allocation4], 4294961920 }
 0x177   :  { %643 = vsyncpa [#allocation3], 1 }
 0x178   :  { %644 = vsyncpa [#allocation4], 1 }

</bundles_post_ra>
